<compile_context>
chip_gen: v7x
topology: tpu7x:2x2x1
jax: 0.10.0
libtpu: 0.0.40
codegen_flags: <defaults>
</compile_context>

<pallas_src>
import functools

import numpy as np
import jax
import jax.numpy as jnp
from jax.experimental import pallas as pl
from jax.experimental.pallas import tpu as pltpu


def _build_pe_table(d_model: int, max_len: int) -> jnp.ndarray:
    """Deterministic sinusoidal table, shape (max_len, 1, d_model), float32."""
    position = np.arange(0, max_len, dtype=np.float32)[:, None]            # (L, 1)
    div_term = np.exp(np.arange(0, d_model, 2, dtype=np.float32)
                      * (-np.log(10000.0) / d_model))                      # (D/2,)
    pe = np.zeros((max_len, d_model), dtype=np.float32)
    pe[:, 0::2] = np.sin(position * div_term)
    pe[:, 1::2] = np.cos(position * div_term)
    return jnp.asarray(pe[:, None, :])                                     # (L, 1, D)


# ----------------------------- kernels --------------------------------------


def _pe_add_kernel(x_ref, pe_ref, o_ref, *, nb, d_model):
    # x_ref / o_ref: (ts, nb*d_model) tiles; pe_ref: (ts, d_model) float32 tile.
    # Broadcast over batch = unrolled per-batch-chunk add on static ref slices
    # (no jnp.tile temp, no extra VMEM store/load; chunks are lane-aligned for
    # d_model that is a multiple of 128).
    pe = pe_ref[...]
    for b in range(nb):
        sl = slice(b * d_model, (b + 1) * d_model)
        o_ref[:, sl] = (x_ref[:, sl].astype(jnp.float32) + pe).astype(o_ref.dtype)


def _hash_bits(idx_u32, seed_u32):
    """lowbias32-style integer mixer -> well-scrambled uint32 bits."""
    h = idx_u32 + seed_u32 * jnp.uint32(0x9E3779B9)
    h = h ^ (h >> 16)
    h = h * jnp.uint32(0x7FEB352D)
    h = h ^ (h >> 15)
    h = h * jnp.uint32(0x846CA68B)
    h = h ^ (h >> 16)
    return h


def _pe_add_dropout_kernel(seed_ref, x_ref, pe_ref, o_ref, *, nb, d_model,
                           dropout_p, lane_width, total_width):
    # Fused inverted dropout.  The keep mask is a hash of the global element
    # index (seq-row * (B*D) + column) plus the seed, so it never touches HBM,
    # is independent of tile size / grid split, and needs no TPU PRNG primitives.
    pe = pe_ref[...]
    ts = o_ref.shape[0]
    row0 = pl.program_id(0) * ts
    col0 = pl.program_id(1) * lane_width
    seed_u = seed_ref[0].astype(jnp.uint32)
    thr = jnp.int32(min(int(dropout_p * float(2 ** 31)), 2 ** 31 - 1))
    scale = jnp.float32(1.0 / (1.0 - dropout_p))
    for b in range(nb):
        sl = slice(b * d_model, (b + 1) * d_model)
        y = x_ref[:, sl].astype(jnp.float32) + pe
        rows = jax.lax.broadcasted_iota(jnp.int32, y.shape, 0) + row0
        cols = jax.lax.broadcasted_iota(jnp.int32, y.shape, 1) + (col0 + b * d_model)
        idx = (rows * total_width + cols).astype(jnp.uint32)
        bits31 = (_hash_bits(idx, seed_u) >> 1).astype(jnp.int32)   # uniform [0, 2^31)
        keep = bits31 >= thr                                        # P(keep) = 1 - p
        o_ref[:, sl] = jnp.where(keep, y * scale, 0.0).astype(o_ref.dtype)


# ----------------------------- tile planning ---------------------------------


def _plan_tiles(S, B, D, itemsize, *, target_tile_bytes=4 << 20, min_total_blocks=4):
    """Pick (seq_tile, batch_chunk, n_lane_blocks).

    Targets ~4 MiB x tiles (HBM streaming sweet spot), keeps the seq tile a
    multiple of the sublane granularity, splits the batch axis across a second
    grid dim when rows are large (so the sublane floor can never blow VMEM),
    and floors the grid at >= min_total_blocks so v7x's two TensorCores both
    get work and double buffering has steps to overlap.
    """
    sub = 8 * max(1, 4 // max(1, int(itemsize)))     # 8 for f32, 16 for bf16
    # ---- lane-axis (batch) split -------------------------------------------
    max_row_block_bytes = max(128 * 1024, target_tile_bytes // sub)
    nb = B
    if D % 128 == 0 and B > 1 and (B * D * itemsize > max_row_block_bytes or B > 32):
        nb = min(B, 32, max(1, max_row_block_bytes // (D * itemsize)))
        while B % nb:
            nb -= 1
    # TODO(synk): a d_model so large that one (sub, d_model) slab exceeds VMEM would
    # need an additional split *within* d_model; not needed for realistic d_model.
    n_lane = B // nb
    row_block_bytes = nb * D * itemsize
    # ---- seq tile ------------------------------------------------------------
    if S <= sub:
        ts = S                                       # full-extent block (legal)
    else:
        ts = max(sub, (target_tile_bytes // row_block_bytes) // sub * sub)
        ts = min(ts, -(-S // sub) * sub)
        while (-(-S // ts)) * n_lane < min_total_blocks and ts > sub:
            ts = max(sub, ((ts // 2) // sub) * sub)
    return ts, nb, n_lane


# ----------------------------- wrapper ---------------------------------------


def positional_encoding_forward(x, pe_table, *, dropout_p=0.1, train=False,
                                seed=0, donate=False):
    """x: (seq_len, batch, d_model); pe_table: (max_len, 1, d_model) float32.
    Returns dropout(x + pe[:seq_len]) with dropout = identity unless train."""
    S, B, D = x.shape
    max_len = pe_table.shape[0]
    if S > max_len:
        raise ValueError(f"seq_len {S} exceeds max_len {max_len}")
    if pe_table.shape[-1] != D:
        raise ValueError("pe_table d_model mismatch")

    x_flat = x.reshape(S, B * D)                      # free, contiguous reshape
    pe_flat = pe_table.reshape(max_len, D)            # stays f32: no per-call cast

    itemsize = x.dtype.itemsize
    ts, nb, n_lane = _plan_tiles(S, B, D, itemsize)
    if ts % 8 != 0:                                   # tiny-S edge: full-extent pe block
        pe_flat = pe_flat[:S]
    tl = nb * D
    ns = -(-S // ts)

    # VMEM limit derived from the actual double-buffered working set.
    x_tile = ts * tl * itemsize
    pe_tile = ts * D * pe_flat.dtype.itemsize
    working_set = 2 * (2 * x_tile + pe_tile)          # x + out + pe, double-buffered
    vmem_limit = int(min(48 << 20, max((working_set * 13) // 10, 32 << 20)))

    compiler_params = pltpu.CompilerParams(
        dimension_semantics=("parallel", "parallel"),  # no carry -> v7x 2-TC sharding
        vmem_limit_bytes=vmem_limit,
    )
    out_shape = jax.ShapeDtypeStruct((S, B * D), x.dtype)

    if (not train) or dropout_p <= 0.0:
        kernel = functools.partial(_pe_add_kernel, nb=nb, d_model=D)
        grid_spec = pltpu.PrefetchScalarGridSpec(
            num_scalar_prefetch=0,
            grid=(ns, n_lane),
            in_specs=[pl.BlockSpec((ts, tl), lambda i, j: (i, j)),
                      pl.BlockSpec((ts, D), lambda i, j: (i, 0))],
            out_specs=pl.BlockSpec((ts, tl), lambda i, j: (i, j)),
        )
        alias = {0: 0} if donate else {}               # only when x is truly donated
        out_flat = pl.pallas_call(
            kernel, out_shape=out_shape, grid_spec=grid_spec,
            input_output_aliases=alias, compiler_params=compiler_params,
        )(x_flat, pe_flat)
    else:
        kernel = functools.partial(
            _pe_add_dropout_kernel, nb=nb, d_model=D,
            dropout_p=float(dropout_p), lane_width=tl, total_width=B * D)
        grid_spec = pltpu.PrefetchScalarGridSpec(
            num_scalar_prefetch=1,                     # seed lives in SMEM
            grid=(ns, n_lane),
            in_specs=[pl.BlockSpec((ts, tl), lambda i, j, s: (i, j)),
                      pl.BlockSpec((ts, D), lambda i, j, s: (i, 0))],
            out_specs=pl.BlockSpec((ts, tl), lambda i, j, s: (i, j)),
        )
        alias = {1: 0} if donate else {}               # input 0 is the prefetched seed
        seeds = jnp.asarray([seed], dtype=jnp.int32)
        out_flat = pl.pallas_call(
            kernel, out_shape=out_shape, grid_spec=grid_spec,
            input_output_aliases=alias, compiler_params=compiler_params,
        )(seeds, x_flat, pe_flat)

    return out_flat.reshape(S, B, D)


# ----------------------------- demo / check ----------------------------------


if __name__ == "__main__":
    d_model = 128          # lane-dense (multiple of 128)
    max_len = 256
    seq_len = 64
    batch = 2

    pe_table = _build_pe_table(d_model, max_len)
    pe_np = np.asarray(pe_table)

    key = jax.random.PRNGKey(0)
    k1, k2 = jax.random.split(key)

    # --- eval mode (dropout = identity), pipelined seq grid ---
    x = jax.random.normal(k1, (seq_len, batch, d_model), dtype=jnp.float32)
    out = positional_encoding_forward(x, pe_table, train=False)
    out = np.asarray(jax.block_until_ready(out))
    ref = np.asarray(x) + pe_np[:seq_len]              # broadcast over batch
    np.testing.assert_allclose(out, ref, rtol=1e-6, atol=1e-6)

    # --- training mode: fused in-kernel dropout (structural/statistical check) ---
    p = 0.1
    x2 = jax.random.normal(k2, (seq_len, batch, d_model), dtype=jnp.float32)
    out_tr = positional_encoding_forward(x2, pe_table, dropout_p=p, train=True,
                                         seed=1234)
    out_tr = np.asarray(jax.block_until_ready(out_tr))
    base = np.asarray(x2) + pe_np[:seq_len]
    kept = out_tr != 0.0
    np.testing.assert_allclose(out_tr[kept], (base / (1.0 - p))[kept],
                               rtol=1e-5, atol=1e-5)
    drop_frac = 1.0 - kept.mean()
    assert 0.02 <= drop_frac <= 0.25, f"unexpected dropout fraction {drop_frac}"

    print("KERNEL_OK")
</pallas_src>

<mosaic_0001>
module attributes {stable_mosaic.version = 11 : i64} {
  func.func @_pe_add_kernel(%arg0: i32, %arg1: i32, %arg2: memref<16x256xf32, #tpu.memory_space<vmem>>, %arg3: memref<16x128xf32, #tpu.memory_space<vmem>>, %arg4: memref<16x256xf32, #tpu.memory_space<vmem>>) attributes {dimension_semantics = [#tpu.dimension_semantics<parallel>, #tpu.dimension_semantics<parallel>], iteration_bounds = array<i64: 4, 1>, scalar_prefetch = 0 : i64, scratch_operands = 0 : i64, tpu.core_type = #tpu.core_type<tc>, window_params = [{transform_indices = @transform_0, window_bounds = array<i64: 16, 256>}, {transform_indices = @transform_1, window_bounds = array<i64: 16, 128>}, {transform_indices = @transform_2, window_bounds = array<i64: 16, 256>}]} {
    %c0 = arith.constant 0 : index
    %c0_0 = arith.constant 0 : index
    %0 = vector.load %arg3[%c0, %c0_0] : memref<16x128xf32, #tpu.memory_space<vmem>>, vector<16x128xf32>
    %c0_1 = arith.constant 0 : index
    %c0_2 = arith.constant 0 : index
    %1 = vector.load %arg2[%c0_1, %c0_2] : memref<16x256xf32, #tpu.memory_space<vmem>>, vector<16x128xf32>
    %2 = arith.addf %1, %0 : vector<16x128xf32>
    %c0_3 = arith.constant 0 : index
    %c0_4 = arith.constant 0 : index
    %3 = vector.load %arg4[%c0_3, %c0_4] : memref<16x256xf32, #tpu.memory_space<vmem>>, vector<16x128xf32>
    tpu.vector_store %arg4[%c0_3, %c0_4], %2 {strides = array<i32>} : memref<16x256xf32, #tpu.memory_space<vmem>>, vector<16x128xf32>,
    %c0_5 = arith.constant 0 : index
    %c128 = arith.constant 128 : index
    %4 = vector.load %arg2[%c0_5, %c128] : memref<16x256xf32, #tpu.memory_space<vmem>>, vector<16x128xf32>
    %5 = arith.addf %4, %0 : vector<16x128xf32>
    %c0_6 = arith.constant 0 : index
    %c128_7 = arith.constant 128 : index
    %6 = vector.load %arg4[%c0_6, %c128_7] : memref<16x256xf32, #tpu.memory_space<vmem>>, vector<16x128xf32>
    tpu.vector_store %arg4[%c0_6, %c128_7], %5 {strides = array<i32>} : memref<16x256xf32, #tpu.memory_space<vmem>>, vector<16x128xf32>,
    return
  }
  func.func @transform_0(%arg0: i32, %arg1: i32) -> (i32, i32) {
    %c0_i32 = arith.constant 0 : i32
    return %arg0, %arg1 : i32, i32
  }
  func.func @transform_1(%arg0: i32, %arg1: i32) -> (i32, i32) {
    %c0_i32 = arith.constant 0 : i32
    %c0_i32_0 = arith.constant 0 : i32
    return %arg0, %c0_i32 : i32, i32
  }
  func.func @transform_2(%arg0: i32, %arg1: i32) -> (i32, i32) {
    %c0_i32 = arith.constant 0 : i32
    return %arg0, %arg1 : i32, i32
  }
}

</mosaic_0001>

<bundles_post_ra>
// kernel: tpu_custom_call.1
= control target key start
LH: loop header
LB: loop body
LE: loop exit
PB: predicated region body
PF: predicated region fallthrough
CT: control target
= control target key end

     0   :  { %7 = vsyncpa [#allocation3], 0  ;;  %s861_s0 = inlined_call_operand.hbm [shape: f32[64,256], index: 0, kind: input, shape index: {}]   ;;  %s862_s1 = inlined_call_operand.hbm [shape: f32[256,128], index: 1, kind: input, shape index: {}]   ;;  %s863_s2 = inlined_call_operand.hbm [shape: f32[64,256], index: 2, kind: output, shape index: {}]  }
   0x1   :  { %9 = vsyncpa [#allocation3 + $0x1], 0 }
   0x2   :  { %10 = vsyncpa [#allocation6], 0 }
   0x3   :  { %12 = vsyncpa [#allocation6 + $0x1], 0 }
   0x4   :  { %13 = vsyncpa [#allocation4], 0 }
   0x5   :  { %15 = vsyncpa [#allocation4 + $0x1], 0  ;;  %s638_s9 = smov 0   ;;  %s640_s10 = smov 0  }
   0x6   :  { %s642_s11 = smov 0   ;;  %s644_s12 = smov 0  }
   0x7   :  { %s646_s13 = smov 0   ;;  %s648_s14 = smov 0  }
   0x8 LB: > { %s367_s15 = sadd.s32 4294967295, %s612_s14   ;;  %s368_s16 = sadd.s32 4294967294, %s612_s14   ;;  %s612_s14 = sphi %s648_s14, %s21_s14   ;;  %s608_s13 = sphi %s646_s13, %s880_s13   ;;  %s604_s12 = sphi %s644_s12, %s879_s12   ;;  %s600_s11 = sphi %s642_s11, %s878_s11   ;;  %s596_s10 = sphi %s640_s10, %s877_s10   ;;  %s592_s9 = sphi %s638_s9, %s876_s9  }
   0x9   : > { %s33_s17 = sadd.s32 1, %s608_s13  ;;  %s42_s18 = sadd.s32 1, %s600_s11 }
   0xa   : > { %p35_p0 = scmp.ge.s32.totalorder %s33_s17, 4  ;;  %p49_p1 = scmp.ne.s32.totalorder %s600_s11, %s596_s10 }
   0xb   : > { %p50_p2 = scmp.eq.s32.totalorder %s612_s14, 0  ;;  %p55_p3 = scmp.ne.s32.totalorder %s596_s10, %s592_s9 }
   0xc   : > { %s882_s17 = smov (%p35_p0, %s33_s17), 0  ;;  %p56_p5 = scmp.eq.s32.totalorder %s367_s15, 0 }
   0xd   : > { %p679_p4 = por %p50_p2, %p49_p1  ;;  %s37_s20 = ssub.s32 %s608_s13, %s882_s17 }
   0xe   : > { %p107_p6 = scmp.eq.s32.totalorder %s367_s15, 3  ;;  %p40_p7 = scmp.eq.s32.totalorder %s37_s20, 0 }
   0xf   : > { %p685_p8 = por %p56_p5, %p55_p3  ;;  %p113_p10 = scmp.eq.s32.totalorder %s368_s16, 3 }
  0x10   : > { %p689_p9 = por %p107_p6, %p49_p1  ;;  %p410_p12 = scmp.lt.s32.totalorder %s612_s14, 4 }
  0x11   : > { %s867_s21 = scalar_select %p685_p8, 1, 0 }
  0x12   : > { %s868_s22 = scalar_select %p689_p9, 1, 0 }
  0x13   : > { %s694_s23 = scalar_select %p40_p7, %s600_s11, %s42_s18  }
  0x14   : > { %p696_p11 = por %p113_p10, %p55_p3  ;;  %s702_s25 = sand.u32 1, %s600_s11  }
  0x15   : > { %s371_s26 = sshll.u32 %s702_s25, 5  ;;  %s389_s27 = sshll.u32 %s608_s13, 9 }
  0x16   : > { %s869_s24 = scalar_select %p696_p11, 1, 0 }
  0x17   : > { %s709_s30 = scalar_lea.hbm %s861_s0, %s389_s27  ;;  %s137_s3 = scalar_lea.vmem [#allocation2], %s371_s26 }
  0x18   : > { %s147_s4 = sshll.u32 %s137_s3, 4  ;;  %p715_p13 = pnand %p410_p12, %p679_p4  ;;  %s711_s4 = int_to_ptr.vmem [resolvable:$true] %s147_s4 }
  0x19   : > { %s134_s6 = scalar_lea.sflag [#allocation3], %s702_s25  ;;  %s466_s7 = scalar_lea.hbm %s709_s30, 512 }
  0x1a   : > { %p467_p1 = scmp.ne.s32.totalorder %s709_s30, %s466_s7  ;;  %p468_p2 = pneg %p715_p13 }
  0x1b   : > { %s471_s16 = scalar_lea.hbm %s861_s0, 2048  ;;  %p472_p4 = scmp.lt.u32.totalorder %s709_s30, %s861_s0 }
  0x1c   : > { %p469_p3 = pnand %p468_p2, %p467_p1  ;;  %p473_p6 = scmp.lt.u32.totalorder %s471_s16, %s466_s7 }
  0x1d   : > { %p475_p10 = scmp.lt.u32.totalorder %s466_s7, %s709_s30 }
  0x1e   : > { %p470_p5 = pneg %p469_p3  ;;  %p474_p7 = por %p473_p6, %p472_p4 }
  0x20   : > { %p476_p12 = por %p475_p10, %p474_p7 }
  0x22   : > { %p477_p0 = pnand %p476_p12, %p470_p5 }
  0x24   : > { %480 = shalt.err (!%p477_p0)
}
  0x25   : > { %s481_s20 = scalar_lea.vmem %s711_s4, 512  ;;  %s614_s26 = smov [#allocation2]  }
  0x26   : > { %p482_p1 = scmp.ne.s32.totalorder %s711_s4, %s481_s20  ;;  %s486_s27 = sshll.u32 %s614_s26, 4  ;;  %s487_s27 = int_to_ptr.vmem [resolvable:$false] %s486_s27 }
  0x27   : > { %s488_s28 = scalar_lea.vmem %s487_s27, 1024  ;;  %p489_p9 = scmp.lt.s32.totalorder %s711_s4, %s487_s27 }
  0x28   : > { %p484_p3 = pnand %p482_p1, %p468_p2  ;;  %p490_p4 = scmp.lt.s32.totalorder %s488_s28, %s481_s20 }
  0x2a   : > { %p485_p11 = pneg %p484_p3  ;;  %p491_p6 = por %p490_p4, %p489_p9 }
  0x2c   : > { %p492_p7 = pnand %p491_p6, %p485_p11 }
  0x2e   : > { %495 = shalt.err (!%p492_p7)
}
  0x2f   : > { %s615_s29 = smov 256   ;;  %s616_s3 = smov 16  }
  0x30   : > { %402 = dma.hbm_to_vmem [thread:$0]  (!%p715_p13), %s709_s30, 512, %s711_s4, %s134_s6, %s615_s29, %s615_s29, %s616_s3  }
  0x31   : > { %p176_p0 = scmp.lt.s32.totalorder %s612_s14, 5  ;;  %s375_s7 = sshll.u32 %s702_s25, 4 }
  0x32   : > { %s390_s8 = sshll.u32 %s608_s13, 8  ;;  %p871_p9 = scmp.ge.s32.totalorder %s612_s14, 1 }
  0x33   : > { %s760_s19 = scalar_lea.hbm %s862_s1, %s390_s8  ;;  %s161_s20 = scalar_lea.vmem [#allocation5], %s375_s7 }
  0x34   : > { %p753_p11 = pnand %p871_p9, %p176_p0  ;;  %s168_s26 = sshll.u32 %s161_s20, 4  ;;  %s762_s26 = int_to_ptr.vmem [resolvable:$true] %s168_s26 }
  0x35   : > { %s158_s30 = scalar_lea.sflag [#allocation6], %s702_s25  ;;  %s496_s4 = scalar_lea.hbm %s760_s19, 256 }
  0x36   : > { %p497_p5 = scmp.ne.s32.totalorder %s760_s19, %s496_s4  ;;  %s501_s28 = scalar_lea.hbm %s862_s1, 4096 }
  0x37   : > { %p502_p1 = scmp.lt.u32.totalorder %s760_s19, %s862_s1  ;;  %p503_p3 = scmp.lt.u32.totalorder %s501_s28, %s496_s4 }
  0x38   : > { %p499_p10 = pnand %p497_p5, %p468_p2  ;;  %p505_p6 = scmp.lt.u32.totalorder %s496_s4, %s760_s19 }
  0x39   : > { %p504_p4 = por %p503_p3, %p502_p1 }
  0x3a   : > { %p500_p12 = pneg %p499_p10 }
  0x3b   : > { %p506_p7 = por %p505_p6, %p504_p4 }
  0x3d   : > { %p507_p0 = pnand %p506_p7, %p500_p12 }
  0x3f   : > { %510 = shalt.err (!%p507_p0)
}
  0x40   : > { %s511_s7 = scalar_lea.vmem %s762_s26, 256  ;;  %s617_s8 = smov [#allocation5]  }
  0x41   : > { %p512_p9 = scmp.ne.s32.totalorder %s762_s26, %s511_s7  ;;  %s516_s16 = sshll.u32 %s617_s8, 4  ;;  %s517_s16 = int_to_ptr.vmem [resolvable:$false] %s516_s16 }
  0x42   : > { %s518_s18 = scalar_lea.vmem %s517_s16, 512  ;;  %p519_p8 = scmp.lt.s32.totalorder %s762_s26, %s517_s16 }
  0x43   : > { %p514_p5 = pnand %p512_p9, %p468_p2  ;;  %p520_p1 = scmp.lt.s32.totalorder %s518_s18, %s511_s7 }
  0x45   : > { %p515_p10 = pneg %p514_p5  ;;  %p521_p3 = por %p520_p1, %p519_p8 }
  0x47   : > { %p522_p4 = pnand %p521_p3, %p515_p10 }
  0x49   : > { %525 = shalt.err (!%p522_p4)
}
  0x4a   : > { %s618_s20 = smov 128   ;;  %s619_s4 = smov 8  }
  0x4b   : > { %405 = dma.hbm_to_vmem [thread:$0]  (!%p715_p13), %s760_s19, 256, %s762_s26, %s158_s30, %s618_s20, %s618_s20, %s619_s4  }
  0x4c   : > { %180 = sbr.rel (%p753_p11) target bundleno = 114 (0x72), region = 28  ;;  %s793_s6 = sand.u32 (!%p753_p11), 1, %s596_s10  }
  0x4d   : > { %s379_s27 = sshll.u32 (!%p753_p11), %s793_s6, 5  ;;  %s183_s28 = scalar_lea.sflag (!%p753_p11), [#allocation3], %s793_s6 }
  0x4e   : > { %s186_s29 = scalar_lea.vmem (!%p753_p11), [#allocation2], %s379_s27  ;;  %p873_p8 = scmp.ne.s32.totalorder (!%p753_p11), %s867_s21, 0 }
  0x53   : > { %579 = dma.done.wait (%p873_p8), %s183_s28, 512  }
  0x54   : > { %581 = vsyncadd (%p873_p8), %s183_s28, 4294966784  ;;  %s380_s25 = sshll.u32 %s793_s6, 4  ;;  %s192_s5 = scalar_lea.sflag [#allocation6], %s793_s6 }
  0x55   : > { %s195_s15 = scalar_lea.vmem [#allocation5], %s380_s25 }
  0x56   : > { %583 = dma.done.wait (%p873_p8), %s192_s5, 256  }
  0x57   : > { %585 = vsyncadd (%p873_p8), %s192_s5, 4294967040  ;;  %s220_s19 = scalar_lea.vmem [#allocation7], %s379_s27  ;;  %s392_s30 = sshll.u32 %s604_s12, 9  ;;  %v226_v0 = vld [vmem:[%s195_s15] sm:$0xff]  ;;  %v227_v2 = vld [vmem:[%s195_s15 + $0x8] sm:$0xff] }
  0x58   : > { %s257_s26 = sshll.u32 %s220_s19, 4  ;;  %v228_v1 = vld [vmem:[%s186_s29] sm:$0xff]  ;;  %v229_v4 = vld [vmem:[%s186_s29 + $0x10] sm:$0xff]  ;;  %v234_v5 = vld [vmem:[%s186_s29 + $0x8] sm:$0xff]  ;;  %s813_s7 = scalar_lea.hbm %s863_s2, %s392_s30  ;;  %s808_s26 = int_to_ptr.vmem [resolvable:$true] %s257_s26 }
  0x59   : > { %v230_v3 = vadd.f32 %v228_v1, %v226_v0  ;;  %v235_v6 = vld [vmem:[%s186_s29 + $0x18] sm:$0xff]  ;;  %v231_v7 = vadd.f32 %v229_v4, %v227_v2  ;;  %v236_v8 = vadd.f32 %v234_v5, %v226_v0  ;;  %s241_s12 = scalar_lea.sflag [#allocation4], %s793_s6  ;;  %s526_s8 = scalar_lea.vmem %s808_s26, 512 }
  0x5a   : > { %v237_v9 = vadd.f32 %v235_v6, %v227_v2  ;;  %p527_p13 = scmp.ne.s32.totalorder %s808_s26, %s526_s8  ;;  %p874_p2 = scmp.ne.s32.totalorder %s868_s22, 0 }
  0x5b   : > { %232 = vst [vmem:[%s220_s19] sm:$0xff] %v230_v3  ;;  %233 = vst [vmem:[%s220_s19 + $0x10] sm:$0xff] %v231_v7  ;;  %s620_s16 = smov [#allocation7]  }
  0x5c   : > { %238 = vst [vmem:[%s220_s19 + $0x8] sm:$0xff] %v236_v8  ;;  %239 = vst [vmem:[%s220_s19 + $0x18] sm:$0xff] %v237_v9  ;;  %p528_p11 = pnand %p527_p13, %p874_p2  ;;  %s530_s18 = sshll.u32 %s620_s16, 4  ;;  %s531_s18 = int_to_ptr.vmem [resolvable:$false] %s530_s18 }
  0x5d   : > { %s532_s20 = scalar_lea.vmem %s531_s18, 1024  ;;  %p533_p6 = scmp.lt.s32.totalorder %s808_s26, %s531_s18 }
  0x5e   : > { %p529_p12 = pneg %p528_p11  ;;  %p534_p7 = scmp.lt.s32.totalorder %s532_s20, %s526_s8 }
  0x60   : > { %p535_p0 = por %p534_p7, %p533_p6 }
  0x62   : > { %p536_p9 = pnand %p535_p0, %p529_p12 }
  0x64   : > { %539 = shalt.err (!%p536_p9)
}
  0x65   : > { %s540_s4 = scalar_lea.hbm %s813_s7, 512  ;;  %s544_s29 = scalar_lea.hbm %s863_s2, 2048 }
  0x66   : > { %p541_p5 = scmp.ne.s32.totalorder %s813_s7, %s540_s4  ;;  %p545_p3 = scmp.lt.u32.totalorder %s813_s7, %s863_s2 }
  0x67   : > { %p546_p4 = scmp.lt.u32.totalorder %s544_s29, %s540_s4  ;;  %p548_p13 = scmp.lt.u32.totalorder %s540_s4, %s813_s7 }
  0x68   : > { %p542_p10 = pnand %p541_p5, %p874_p2 }
  0x69   : > { %p547_p8 = por %p546_p4, %p545_p3 }
  0x6a   : > { %p543_p1 = pneg %p542_p10 }
  0x6b   : > { %p549_p11 = por %p548_p13, %p547_p8 }
  0x6d   : > { %p550_p12 = pnand %p549_p11, %p543_p1 }
  0x6f   : > { %553 = shalt.err (!%p550_p12)
}
  0x70   : > { %s621_s15 = smov 256   ;;  %s622_s19 = smov 16  }
  0x71   : > { %397 = dma.vmem_to_hbm [thread:$0]  (%p874_p2), %s808_s26, 512, %s813_s7, %s241_s12, %s621_s15, %s621_s15, %s622_s19  }
  0x72 PF: > { %p411_p6 = scmp.ge.s32.totalorder %s612_s14, 2  ;;  %s272_s30 = sand.u32 1, %s592_s9  }
  0x73   : > { %p875_p7 = scmp.ne.s32.totalorder %s869_s24, 0  ;;  %s273_s3 = scalar_lea.sflag [#allocation4], %s272_s30 }
  0x75   : > { %p407_p0 = pnand %p411_p6, %p875_p7 }
  0x77   : > { %587 = dma.done.wait (!%p407_p0), %s273_s3, 512  }
  0x78   : > { %589 = vsyncadd (!%p407_p0), %s273_s3, 4294966784  ;;  %s21_s14 = sadd.s32 1, %s612_s14   ;;  %s876_s9 = smov %s596_s10 }
  0x79   : > { %p18_p9 = scmp.ge.s32.totalorder %s21_s14, 6   ;;  %s877_s10 = smov %s600_s11 }
  0x7a   : > { %s878_s11 = smov %s694_s23  ;;  %s879_s12 = smov %s608_s13 }
  0x7b   : > { %s880_s13 = smov %s882_s17  ;;  %20 = sbr.rel (!%p18_p9) target bundleno = 8 (0x8), region = 86 }
  0x82   :  { %278 = vsyncpa [#allocation3], 1 }
  0x83   :  { %280 = vsyncpa [#allocation3 + $0x1], 1 }
  0x84   :  { %281 = vsyncpa [#allocation6], 1 }
  0x85   :  { %283 = vsyncpa [#allocation6 + $0x1], 1 }
  0x86   :  { %284 = vsyncpa [#allocation4], 1 }
  0x87   :  { %286 = vsyncpa [#allocation4 + $0x1], 1 }

</bundles_post_ra>
